<compile_context>
chip_gen: v6e
topology: v6e:2x2x1
jax: 0.10.0
libtpu: 0.0.40
codegen_flags: <defaults>
</compile_context>

<pallas_src>
import functools
import math

import jax
import jax.numpy as jnp
from jax import lax
from jax.experimental import pallas as pl
from jax.experimental.pallas import tpu as pltpu


# --------------------------------------------------------------------------- #
# prep kernel: normalized rows * 1/sqrt(temperature)
# --------------------------------------------------------------------------- #
def _prep_kernel(zi_ref, zj_ref, zs_ref, *, scale):
    h = pl.program_id(0)  # 0 -> z_i half, 1 -> z_j half

    def _normalize_store(src_ref):
        z = src_ref[...].astype(jnp.float32)
        ssq = jnp.sum(z * z, axis=1, keepdims=True)
        # F.normalize(dim=1, eps=1e-12): clamp the squared norm at eps^2.
        zn = z * lax.rsqrt(jnp.maximum(ssq, jnp.float32(1e-24)))
        zs_ref[...] = (zn * jnp.float32(scale)).astype(zs_ref.dtype)

    @pl.when(h == 0)
    def _():
        _normalize_store(zi_ref)

    @pl.when(h != 0)
    def _():
        _normalize_store(zj_ref)


# --------------------------------------------------------------------------- #
# main kernel: tiled online logsumexp over the similarity matrix
# --------------------------------------------------------------------------- #
def _ntxent_kernel(zs_ref, zst_ref, o_ref, m_sc, l_sc, pos_sc, *,
                   tile_m, tile_n, half_blocks):
    # zs_ref : (2N, D)  VMEM-resident, rows = zn / sqrt(T)
    # zst_ref: (D, 2N)  VMEM-resident transposed copy (RHS for NN matmul)
    # o_ref  : (TILE_M, 1) per-row loss for this row tile
    # scratch: running max / running sum-exp / positive logit, (TILE_M, 1) f32
    i = pl.program_id(0)
    j = pl.program_id(1)
    nb_rows = pl.num_programs(0)
    nb_cols = pl.num_programs(1)

    row0 = pl.multiple_of(i * tile_m, tile_m)
    col0 = pl.multiple_of(j * tile_n, tile_n)

    a = zs_ref[pl.ds(row0, tile_m), :]               # (TILE_M, D)

    @pl.when(j == 0)
    def _init():
        m_sc[...] = jnp.full((tile_m, 1), -jnp.inf, dtype=jnp.float32)
        l_sc[...] = jnp.zeros((tile_m, 1), dtype=jnp.float32)
        # positive logit: zn_i . zn_{(i+N) mod 2N} / T, via a row-wise VPU dot
        # with the partner row tile (both operands already carry 1/sqrt(T)).
        p_blk = (i + half_blocks) % nb_rows
        prow0 = pl.multiple_of(p_blk * tile_m, tile_m)
        p = zs_ref[pl.ds(prow0, tile_m), :]
        pos_sc[...] = jnp.sum(a.astype(jnp.float32) * p.astype(jnp.float32),
                              axis=1, keepdims=True)

    b = zst_ref[:, pl.ds(col0, tile_n)]              # (D, TILE_N)
    # sim block = (zn/sqrt(T)) @ (zn/sqrt(T)).T = zn@zn.T / T   (MXU, f32 acc)
    s = jnp.dot(a, b, preferred_element_type=jnp.float32)

    # Mask the global diagonal exactly like the reference (-9e15 -> exp == 0).
    # Per-block O(TILE_M*TILE_N) iota/select; free filler under the exp/MXU
    # bound (never a full (2N,2N) mask).
    r = row0 + lax.broadcasted_iota(jnp.int32, (tile_m, tile_n), 0)
    c = col0 + lax.broadcasted_iota(jnp.int32, (tile_m, tile_n), 1)
    s = jnp.where(r == c, jnp.float32(-9e15), s)

    # Online logsumexp update (each sim entry exponentiated exactly once).
    m_prev = m_sc[...]
    m_new = jnp.maximum(m_prev, jnp.max(s, axis=1, keepdims=True))
    l_sc[...] = (jnp.exp(m_prev - m_new) * l_sc[...]
                 + jnp.sum(jnp.exp(s - m_new), axis=1, keepdims=True))
    m_sc[...] = m_new

    @pl.when(j == nb_cols - 1)
    def _finalize():
        pos = pos_sc[...]
        m = m_sc[...]
        # logits = [pos, all off-diagonal row entries] (pos appears twice, as in
        # the reference).  pos <= m always, so m alone is a valid stabilizer.
        lse = m + jnp.log(l_sc[...] + jnp.exp(pos - m))
        o_ref[...] = lse - pos


# --------------------------------------------------------------------------- #
# wrapper
# --------------------------------------------------------------------------- #
def _pick_tile(total, preferred, align):
    t = min(preferred, total)
    t -= t % align
    while t > 0 and total % t != 0:
        t -= align
    return t if t > 0 else total


def ntxent_loss(z_i, z_j, temperature=0.5, *, tile_m=None, tile_n=None):
    n, d = z_i.shape
    assert z_j.shape == (n, d)
    two_n = 2 * n
    if n % 8 != 0:
        # TODO(synk): pad/mask path for batch sizes that are not a multiple of 8.
        raise ValueError("ntxent_loss requires the batch size N to be a multiple of 8")

    if tile_m is None:
        tile_m = _pick_tile(n, 256, 8)        # row tile (sublane-aligned, divides N)
    if tile_n is None:
        tile_n = _pick_tile(two_n, 512, 128)  # col tile (lane-aligned or full width)
    assert n % tile_m == 0 and tile_m % 8 == 0, (n, tile_m)
    assert two_n % tile_n == 0, (two_n, tile_n)

    half_blocks = n // tile_m
    nb_rows = 2 * half_blocks
    nb_cols = two_n // tile_n
    dtype = z_i.dtype  # bf16 inputs stay bf16 for the MXU; math stays f32

    # ---- 1) prep: normalize rows and fold in 1/sqrt(temperature) ----------- #
    scale = 1.0 / math.sqrt(float(temperature))
    zs = pl.pallas_call(
        functools.partial(_prep_kernel, scale=scale),
        out_shape=jax.ShapeDtypeStruct((two_n, d), dtype),
        grid=(2, half_blocks),
        in_specs=[pl.BlockSpec((tile_m, d), lambda h, t: (t, 0)),
                  pl.BlockSpec((tile_m, d), lambda h, t: (t, 0))],
        out_specs=pl.BlockSpec((tile_m, d),
                               lambda h, t: (h * half_blocks + t, 0)),
        compiler_params=pltpu.CompilerParams(
            dimension_semantics=("parallel", "parallel")),
    )(z_i, z_j)

    # One-time lane-major copy for the RHS (NN matmul in the main kernel;
    # avoids per-block XLU transposes).  O(2N*D) glue.
    zs_t = zs.T  # (D, 2N)

    # ---- 2) main: tiled online logsumexp + per-row loss -------------------- #
    per_row = pl.pallas_call(
        functools.partial(_ntxent_kernel, tile_m=tile_m, tile_n=tile_n,
                          half_blocks=half_blocks),
        out_shape=jax.ShapeDtypeStruct((two_n, 1), jnp.float32),
        grid=(nb_rows, nb_cols),
        in_specs=[pl.BlockSpec(memory_space=pltpu.MemorySpace.VMEM),   # zs resident
                  pl.BlockSpec(memory_space=pltpu.MemorySpace.VMEM)],  # zs.T resident
        out_specs=pl.BlockSpec((tile_m, 1), lambda i, j: (i, 0)),
        scratch_shapes=[pltpu.VMEM((tile_m, 1), jnp.float32),   # running max
                        pltpu.VMEM((tile_m, 1), jnp.float32),   # running sum-exp
                        pltpu.VMEM((tile_m, 1), jnp.float32)],  # positives
        compiler_params=pltpu.CompilerParams(
            dimension_semantics=("parallel", "arbitrary")),
    )(zs, zs_t)

    # mean cross-entropy over the 2N rows (tiny O(2N) reduction).
    return jnp.mean(per_row)


# --------------------------------------------------------------------------- #
# pure-JAX reference (mirrors the PyTorch module)
# --------------------------------------------------------------------------- #
def ntxent_loss_ref(z_i, z_j, temperature=0.5):
    n = z_i.shape[0]
    z = jnp.concatenate([z_i, z_j], axis=0)
    zn = z / jnp.maximum(jnp.linalg.norm(z, axis=1, keepdims=True), 1e-12)
    sim = zn @ zn.T / temperature
    mask = jnp.eye(2 * n, dtype=bool)
    sim = jnp.where(mask, -9e15, sim)
    positives = jnp.concatenate([jnp.diagonal(sim, n), jnp.diagonal(sim, -n)])
    negatives = sim[~mask].reshape(2 * n, -1)
    logits = jnp.concatenate([positives[:, None], negatives], axis=1)
    lse = jax.nn.logsumexp(logits, axis=1)
    return jnp.mean(lse - logits[:, 0])


if __name__ == "__main__":
    # NTXentLoss has no learnable parameters; temperature=0.5 (default).
    N, D = 128, 32
    key = jax.random.PRNGKey(0)
    k1, k2 = jax.random.split(key)
    z_i = jax.random.normal(k1, (N, D), dtype=jnp.float32)
    z_j = jax.random.normal(k2, (N, D), dtype=jnp.float32)

    # default tiles (here: 2 row tiles x 1 col tile)
    loss = ntxent_loss(z_i, z_j, temperature=0.5)
    loss = jax.block_until_ready(loss)

    # small explicit tiles to exercise the multi-block online-softmax path
    loss_tiled = ntxent_loss(z_i, z_j, temperature=0.5, tile_m=64, tile_n=128)
    loss_tiled = jax.block_until_ready(loss_tiled)

    loss_ref = ntxent_loss_ref(z_i, z_j, temperature=0.5)
    assert jnp.allclose(loss, loss_ref, rtol=1e-5, atol=1e-5), (loss, loss_ref)
    assert jnp.allclose(loss_tiled, loss_ref, rtol=1e-5, atol=1e-5), (loss_tiled, loss_ref)

    print("KERNEL_OK")
</pallas_src>

<mosaic_0001>
module attributes {stable_mosaic.version = 11 : i64} {
  func.func @_prep_kernel(%arg0: i32, %arg1: i32, %arg2: memref<128x32xf32, #tpu.memory_space<vmem>>, %arg3: memref<128x32xf32, #tpu.memory_space<vmem>>, %arg4: memref<128x32xf32, #tpu.memory_space<vmem>>) attributes {dimension_semantics = [#tpu.dimension_semantics<parallel>, #tpu.dimension_semantics<parallel>], iteration_bounds = array<i64: 2, 1>, scalar_prefetch = 0 : i64, scratch_operands = 0 : i64, tpu.core_type = #tpu.core_type<tc>, window_params = [{transform_indices = @transform_0, window_bounds = array<i64: 128, 32>}, {transform_indices = @transform_1, window_bounds = array<i64: 128, 32>}, {transform_indices = @transform_2, window_bounds = array<i64: 128, 32>}]} {
    %c0_i32 = arith.constant 0 : i32
    %0 = arith.cmpi eq, %arg0, %c0_i32 : i32
    %1 = arith.extui %0 : i1 to i32
    %c0_i32_0 = arith.constant 0 : i32
    %2 = arith.cmpi ne, %1, %c0_i32_0 : i32
    scf.if %2 {
      %c0 = arith.constant 0 : index
      %c0_3 = arith.constant 0 : index
      %6 = vector.load %arg2[%c0, %c0_3] : memref<128x32xf32, #tpu.memory_space<vmem>>, vector<128x32xf32>
      %7 = arith.mulf %6, %6 : vector<128x32xf32>
      %cst = arith.constant dense<0.000000e+00> : vector<128xf32>
      %8 = vector.multi_reduction <add>, %7, %cst [1] : vector<128x32xf32> to vector<128xf32>
      %9 = vector.shape_cast %8 : vector<128xf32> to vector<128x1xf32>
      %cst_4 = arith.constant 1.000000e-24 : f32
      %10 = vector.broadcast %cst_4 : f32 to vector<128x1xf32>
      %11 = arith.maximumf %9, %10 : vector<128x1xf32>
      %12 = math.rsqrt %11 : vector<128x1xf32>
      %13 = vector.broadcast %12 : vector<128x1xf32> to vector<128x32xf32>
      %14 = arith.mulf %6, %13 : vector<128x32xf32>
      %cst_5 = arith.constant 1.41421354 : f32
      %15 = vector.broadcast %cst_5 : f32 to vector<128x32xf32>
      %16 = arith.mulf %14, %15 : vector<128x32xf32>
      %c0_6 = arith.constant 0 : index
      %c0_7 = arith.constant 0 : index
      %17 = vector.load %arg4[%c0_6, %c0_7] : memref<128x32xf32, #tpu.memory_space<vmem>>, vector<128x32xf32>
      tpu.vector_store %arg4[%c0_6, %c0_7], %16 {strides = array<i32>} : memref<128x32xf32, #tpu.memory_space<vmem>>, vector<128x32xf32>,
    } else {
    }
    %c0_i32_1 = arith.constant 0 : i32
    %3 = arith.cmpi ne, %arg0, %c0_i32_1 : i32
    %4 = arith.extui %3 : i1 to i32
    %c0_i32_2 = arith.constant 0 : i32
    %5 = arith.cmpi ne, %4, %c0_i32_2 : i32
    scf.if %5 {
      %c0 = arith.constant 0 : index
      %c0_3 = arith.constant 0 : index
      %6 = vector.load %arg3[%c0, %c0_3] : memref<128x32xf32, #tpu.memory_space<vmem>>, vector<128x32xf32>
      %7 = arith.mulf %6, %6 : vector<128x32xf32>
      %cst = arith.constant dense<0.000000e+00> : vector<128xf32>
      %8 = vector.multi_reduction <add>, %7, %cst [1] : vector<128x32xf32> to vector<128xf32>
      %9 = vector.shape_cast %8 : vector<128xf32> to vector<128x1xf32>
      %cst_4 = arith.constant 1.000000e-24 : f32
      %10 = vector.broadcast %cst_4 : f32 to vector<128x1xf32>
      %11 = arith.maximumf %9, %10 : vector<128x1xf32>
      %12 = math.rsqrt %11 : vector<128x1xf32>
      %13 = vector.broadcast %12 : vector<128x1xf32> to vector<128x32xf32>
      %14 = arith.mulf %6, %13 : vector<128x32xf32>
      %cst_5 = arith.constant 1.41421354 : f32
      %15 = vector.broadcast %cst_5 : f32 to vector<128x32xf32>
      %16 = arith.mulf %14, %15 : vector<128x32xf32>
      %c0_6 = arith.constant 0 : index
      %c0_7 = arith.constant 0 : index
      %17 = vector.load %arg4[%c0_6, %c0_7] : memref<128x32xf32, #tpu.memory_space<vmem>>, vector<128x32xf32>
      tpu.vector_store %arg4[%c0_6, %c0_7], %16 {strides = array<i32>} : memref<128x32xf32, #tpu.memory_space<vmem>>, vector<128x32xf32>,
    } else {
    }
    return
  }
  func.func @transform_0(%arg0: i32, %arg1: i32) -> (i32, i32) {
    %c0_i32 = arith.constant 0 : i32
    %c0_i32_0 = arith.constant 0 : i32
    return %arg1, %c0_i32 : i32, i32
  }
  func.func @transform_1(%arg0: i32, %arg1: i32) -> (i32, i32) {
    %c0_i32 = arith.constant 0 : i32
    %c0_i32_0 = arith.constant 0 : i32
    return %arg1, %c0_i32 : i32, i32
  }
  func.func @transform_2(%arg0: i32, %arg1: i32) -> (i32, i32) {
    %c1_i32 = arith.constant 1 : i32
    %0 = arith.muli %arg0, %c1_i32 : i32
    %1 = arith.addi %0, %arg1 : i32
    %c0_i32 = arith.constant 0 : i32
    %c0_i32_0 = arith.constant 0 : i32
    return %1, %c0_i32 : i32, i32
  }
}

</mosaic_0001>

<bundles_post_ra>
// kernel: tpu_custom_call.1
= control target key start
LH: loop header
LB: loop body
LE: loop exit
PB: predicated region body
PF: predicated region fallthrough
CT: control target
= control target key end

     0   :  { %s741_s9 = smov 0   ;;  %s743_s10 = smov 0   ;;  %s1130_s0 = inlined_call_operand.vmem [shape: f32[128,32], index: 0, kind: input, shape index: {}]   ;;  %s1131_s1 = inlined_call_operand.vmem [shape: f32[128,32], index: 1, kind: input, shape index: {}]   ;;  %s1132_s2 = inlined_call_operand.vmem [shape: f32[256,32], index: 2, kind: output, shape index: {}]  }
   0x1   :  { %s745_s11 = smov 0  }
   0x2 LB: > { %s24_s12 = sadd.s32 1, %s720_s10  ;;  %p607_p0 = scmp.ge.s32.totalorder %s724_s11, 1  ;;  %s724_s11 = sphi %s745_s11, %s12_s11   ;;  %s720_s10 = sphi %s743_s10, %s1134_s10   ;;  %s716_s9 = sphi %s741_s9, %s1133_s9  }
   0x3   : > { %p26_p1 = scmp.ge.s32.totalorder %s24_s12, 2  ;;  %p138_p2 = scmp.lt.s32.totalorder %s724_s11, 3 }
   0x5   : > { %s1136_s12 = smov (%p26_p1, %s24_s12), 0  ;;  %p139_p3 = pnand %p607_p0, %p138_p2 }
   0x6   : > { %s608_s13 = sshll.u32 (!%p139_p3), %s716_s9, 4  ;;  %p610_p5 = scmp.ne.s32.totalorder (!%p139_p3), %s716_s9, 0 }
   0x7   : > { %142 = sbr.rel (%p139_p3) target bundleno = 408 (0x198), region = 28  ;;  %p180_p4 = scmp.lt.s32.totalorder (!%p139_p3), %s608_s13, 31 }
   0xc   : > { %s1138_s13 = smov (!%p180_p4, %s608_s13), 31  ;;  %189 = sbr.rel (%p610_p5) target bundleno = 209 (0xd1), region = 32 }
   0xd   : > { %s609_s14 = sshll.u32 %s1138_s13, 3 }
   0xe   : > { %s765_s17 = scalar_lea.vmem %s1132_s2, %s609_s14 }
  0x11   : > { %v771_v0 = vld [vmem:[%s1130_s0 + $0x10] sm:$0xff]  ;;  %vm222_vm0 = vcmask 261120   ;;  %v776_v1 = vld [vmem:[%s1130_s0] sm:$0xff]  ;;  %v781_v2 = vld [vmem:[%s1130_s0 + $0x18] sm:$0xff] }
  0x12   : > { %v208_v3 = vmul.f32 %v771_v0, %v771_v0  ;;  %v206_v4 = vmul.f32 %v776_v1, %v776_v1  ;;  %v209_v5 = vmul.f32 %v781_v2, %v781_v2  ;;  %v792_v6 = vld [vmem:[%s1130_s0 + $0x8] sm:$0xff]  ;;  %v804_v9 = vld [vmem:[%s1130_s0 + $0x20] sm:$0xff]  ;;  %v817_v16 = vld [vmem:[%s1130_s0 + $0x38] sm:$0xff] }
  0x13   : > { %v207_v7 = vmul.f32 %v792_v6, %v792_v6  ;;  %v799_v8 = vld [vmem:[%s1130_s0 + $0x28] sm:$0xff]  ;;  %v210_v15 = vmul.f32 %v804_v9, %v804_v9  ;;  %v822_v17 = vld [vmem:[%s1130_s0 + $0x30] sm:$0xff]  ;;  %v213_v20 = vmul.f32 %v817_v16, %v817_v16  ;;  %v838_v23 = vld [vmem:[%s1130_s0 + $0x40] sm:$0xff] }
  0x14   : > { %v229_v10 = vsel %vm222_vm0, %v208_v3, 0.0  ;;  %v223_v11 = vsel %vm222_vm0, %v206_v4, 0.0  ;;  %v232_v12 = vsel %vm222_vm0, %v209_v5, 0.0  ;;  %v211_v14 = vmul.f32 %v799_v8, %v799_v8  ;;  %v833_v22 = vld [vmem:[%s1130_s0 + $0x48] sm:$0xff]  ;;  %v849_v28 = vld [vmem:[%s1130_s0 + $0x58] sm:$0xff]  ;;  %v854_v29 = vld [vmem:[%s1130_s0 + $0x50] sm:$0xff] }
  0x15   : > { %230 = vadd.xlane.f32.xlu1 %v229_v10  ;;  %224 = vadd.xlane.f32.xlu0 %v223_v11  ;;  %v226_v13 = vsel %vm222_vm0, %v207_v7, 0.0  ;;  %v235_v19 = vsel %vm222_vm0, %v210_v15, 0.0  ;;  %v212_v21 = vmul.f32 %v822_v17, %v822_v17  ;;  %v244_v24 = vsel %vm222_vm0, %v213_v20, 0.0  ;;  %v865_v34 = vld [vmem:[%s1130_s0 + $0x68] sm:$0xff]  ;;  %v870_v35 = vld [vmem:[%s1130_s0 + $0x60] sm:$0xff]  ;;  %v881_v40 = vld [vmem:[%s1130_s0 + $0x78] sm:$0xff] }
  0x16   : > { %v238_v18 = vsel %vm222_vm0, %v211_v14, 0.0  ;;  %v215_v26 = vmul.f32 %v833_v22, %v833_v22  ;;  %v214_v27 = vmul.f32 %v838_v23, %v838_v23  ;;  %v217_v32 = vmul.f32 %v849_v28, %v849_v28  ;;  %v886_v41 = vld [vmem:[%s1130_s0 + $0x70] sm:$0xff] }
  0x17   : > { %v241_v25 = vsel %vm222_vm0, %v212_v21, 0.0  ;;  %v216_v33 = vmul.f32 %v854_v29, %v854_v29  ;;  %v219_v38 = vmul.f32 %v865_v34, %v865_v34  ;;  %v218_v39 = vmul.f32 %v870_v35, %v870_v35 }
  0x18   : > { %v250_v30 = vsel %vm222_vm0, %v215_v26, 0.0  ;;  %v247_v31 = vsel %vm222_vm0, %v214_v27, 0.0  ;;  %v256_v36 = vsel %vm222_vm0, %v217_v32, 0.0  ;;  %v221_v44 = vmul.f32 %v881_v40, %v881_v40 }
  0x19   : > { %233 = vadd.xlane.f32.xlu1 %v232_v12  ;;  %227 = vadd.xlane.f32.xlu0 %v226_v13  ;;  %v253_v37 = vsel %vm222_vm0, %v216_v33, 0.0  ;;  %v262_v42 = vsel %vm222_vm0, %v219_v38, 0.0  ;;  %v259_v43 = vsel %vm222_vm0, %v218_v39, 0.0  ;;  %v220_v45 = vmul.f32 %v886_v41, %v886_v41 }
  0x1a   : > { %v268_v46 = vsel %vm222_vm0, %v221_v44, 0.0 }
  0x1b   : > { %v265_v47 = vsel %vm222_vm0, %v220_v45, 0.0 }
  0x1d   : > { %239 = vadd.xlane.f32.xlu1 %v238_v18  ;;  %236 = vadd.xlane.f32.xlu0 %v235_v19 }
  0x21   : > { %245 = vadd.xlane.f32.xlu1 %v244_v24  ;;  %242 = vadd.xlane.f32.xlu0 %v241_v25 }
  0x25   : > { %251 = vadd.xlane.f32.xlu1 %v250_v30  ;;  %248 = vadd.xlane.f32.xlu0 %v247_v31 }
  0x29   : > { %257 = vadd.xlane.f32.xlu1 %v256_v36  ;;  %254 = vadd.xlane.f32.xlu0 %v253_v37 }
  0x2d   : > { %263 = vadd.xlane.f32.xlu1 %v262_v42  ;;  %260 = vadd.xlane.f32.xlu0 %v259_v43 }
  0x31   : > { %269 = vadd.xlane.f32.xlu1 %v268_v46  ;;  %266 = vadd.xlane.f32.xlu0 %v265_v47 }
  0x9e   : > { %v231_v48 = vpop.xlane.xlu1 %230  ;;  %v225_v49 = vpop.xlane.xlu0 %224 }
  0x9f   : > { %v273_v50 = vmax.f32 %v231_v48, 1e-24  ;;  %v271_v51 = vmax.f32 %v225_v49, 1e-24 }
  0xa1   : > { %638 = vrsqrt.f32 %v273_v50 }
  0xa2   : > { %640 = vrsqrt.f32 %v271_v51  ;;  %v234_v52 = vpop.xlane.xlu1 %233  ;;  %v228_v53 = vpop.xlane.xlu0 %227 }
  0xa3   : > { %v274_v54 = vmax.f32 %v234_v52, 1e-24  ;;  %v272_v55 = vmax.f32 %v228_v53, 1e-24 }
  0xa5   : > { %642 = vrsqrt.f32 %v274_v54 }
  0xa6   : > { %644 = vrsqrt.f32 %v272_v55  ;;  %v240_v56 = vpop.xlane.xlu1 %239  ;;  %v237_v57 = vpop.xlane.xlu0 %236 }
  0xa7   : > { %v276_v58 = vmax.f32 %v240_v56, 1e-24  ;;  %v275_v59 = vmax.f32 %v237_v57, 1e-24 }
  0xa9   : > { %646 = vrsqrt.f32 %v276_v58 }
  0xaa   : > { %648 = vrsqrt.f32 %v275_v59  ;;  %v246_v60 = vpop.xlane.xlu1 %245  ;;  %v243_v61 = vpop.xlane.xlu0 %242 }
  0xab   : > { %v278_v62 = vmax.f32 %v246_v60, 1e-24  ;;  %v277_v63 = vmax.f32 %v243_v61, 1e-24 }
  0xad   : > { %650 = vrsqrt.f32 %v278_v62 }
  0xae   : > { %v639_v3 = vpop.eup %638  ;;  %652 = vrsqrt.f32 %v277_v63  ;;  %v252_v4 = vpop.xlane.xlu1 %251 }
  0xaf   : > { %v249_v5 = vpop.xlane.xlu0 %248  ;;  %v641_v7 = vpop.eup %640  ;;  %v305_v10 = vmul.f32 %v639_v3, %v771_v0  ;;  %v280_v11 = vmax.f32 %v252_v4, 1e-24 }
  0xb0   : > { %v279_v12 = vmax.f32 %v249_v5, 1e-24  ;;  %v303_v13 = vmul.f32 %v641_v7, %v776_v1 }
  0xb1   : > { %v321_v14 = vmul.f32 1.4142135, %v305_v10  ;;  %654 = vrsqrt.f32 %v280_v11 }
  0xb2   : > { %v643_v15 = vpop.eup %642  ;;  %v319_v18 = vmul.f32 1.4142135, %v303_v13  ;;  %656 = vrsqrt.f32 %v279_v12  ;;  %v258_v19 = vpop.xlane.xlu1 %257 }
  0xb3   : > { %v255_v20 = vpop.xlane.xlu0 %254  ;;  %v645_v21 = vpop.eup %644  ;;  %337 = vst.msk [vmem:[%s765_s17 + $0x10] sm:$0xff] %vm222_vm0, %v321_v14  ;;  %v306_v24 = vmul.f32 %v643_v15, %v781_v2  ;;  %v282_v25 = vmax.f32 %v258_v19, 1e-24 }
  0xb4   : > { %v281_v0 = vmax.f32 %v255_v20, 1e-24  ;;  %335 = vst.msk [vmem:[%s765_s17] sm:$0xff] %vm222_vm0, %v319_v18  ;;  %v304_v1 = vmul.f32 %v645_v21, %v792_v6 }
  0xb5   : > { %v322_v26 = vmul.f32 1.4142135, %v306_v24  ;;  %658 = vrsqrt.f32 %v282_v25 }
  0xb6   : > { %v647_v27 = vpop.eup %646  ;;  %v320_v30 = vmul.f32 1.4142135, %v304_v1  ;;  %660 = vrsqrt.f32 %v281_v0  ;;  %v264_v31 = vpop.xlane.xlu1 %263 }
  0xb7   : > { %v261_v32 = vpop.xlane.xlu0 %260  ;;  %v649_v33 = vpop.eup %648  ;;  %338 = vst.msk [vmem:[%s765_s17 + $0x18] sm:$0xff] %vm222_vm0, %v322_v26  ;;  %v308_v2 = vmul.f32 %v647_v27, %v799_v8  ;;  %v284_v36 = vmax.f32 %v264_v31, 1e-24 }
  0xb8   : > { %v283_v37 = vmax.f32 %v261_v32, 1e-24  ;;  %336 = vst.msk [vmem:[%s765_s17 + $0x8] sm:$0xff] %vm222_vm0, %v320_v30  ;;  %v307_v6 = vmul.f32 %v649_v33, %v804_v9 }
  0xb9   : > { %v324_v38 = vmul.f32 1.4142135, %v308_v2  ;;  %662 = vrsqrt.f32 %v284_v36 }
  0xba   : > { %v651_v39 = vpop.eup %650  ;;  %v323_v42 = vmul.f32 1.4142135, %v307_v6  ;;  %664 = vrsqrt.f32 %v283_v37  ;;  %v270_v43 = vpop.xlane.xlu1 %269 }
  0xbb   : > { %v267_v44 = vpop.xlane.xlu0 %266  ;;  %v653_v45 = vpop.eup %652  ;;  %340 = vst.msk [vmem:[%s765_s17 + $0x28] sm:$0xff] %vm222_vm0, %v324_v38  ;;  %v310_v8 = vmul.f32 %v651_v39, %v817_v16  ;;  %v286_v46 = vmax.f32 %v270_v43, 1e-24 }
  0xbc   : > { %v285_v47 = vmax.f32 %v267_v44, 1e-24  ;;  %339 = vst.msk [vmem:[%s765_s17 + $0x20] sm:$0xff] %vm222_vm0, %v323_v42  ;;  %v309_v9 = vmul.f32 %v653_v45, %v822_v17 }
  0xbd   : > { %v326_v48 = vmul.f32 1.4142135, %v310_v8  ;;  %666 = vrsqrt.f32 %v286_v46 }
  0xbe   : > { %v655_v49 = vpop.eup %654  ;;  %v325_v50 = vmul.f32 1.4142135, %v309_v9  ;;  %668 = vrsqrt.f32 %v285_v47 }
  0xbf   : > { %v657_v51 = vpop.eup %656  ;;  %342 = vst.msk [vmem:[%s765_s17 + $0x38] sm:$0xff] %vm222_vm0, %v326_v48  ;;  %v312_v52 = vmul.f32 %v655_v49, %v833_v22 }
  0xc0   : > { %341 = vst.msk [vmem:[%s765_s17 + $0x30] sm:$0xff] %vm222_vm0, %v325_v50  ;;  %v311_v16 = vmul.f32 %v657_v51, %v838_v23 }
  0xc1   : > { %v328_v53 = vmul.f32 1.4142135, %v312_v52 }
  0xc2   : > { %v659_v54 = vpop.eup %658  ;;  %v327_v17 = vmul.f32 1.4142135, %v311_v16 }
  0xc3   : > { %v661_v55 = vpop.eup %660  ;;  %344 = vst.msk [vmem:[%s765_s17 + $0x48] sm:$0xff] %vm222_vm0, %v328_v53  ;;  %v314_v56 = vmul.f32 %v659_v54, %v849_v28 }
  0xc4   : > { %343 = vst.msk [vmem:[%s765_s17 + $0x40] sm:$0xff] %vm222_vm0, %v327_v17  ;;  %v313_v57 = vmul.f32 %v661_v55, %v854_v29 }
  0xc5   : > { %v330_v22 = vmul.f32 1.4142135, %v314_v56 }
  0xc6   : > { %v663_v58 = vpop.eup %662  ;;  %v329_v59 = vmul.f32 1.4142135, %v313_v57 }
  0xc7   : > { %v665_v60 = vpop.eup %664  ;;  %346 = vst.msk [vmem:[%s765_s17 + $0x58] sm:$0xff] %vm222_vm0, %v330_v22  ;;  %v316_v23 = vmul.f32 %v663_v58, %v865_v34 }
  0xc8   : > { %345 = vst.msk [vmem:[%s765_s17 + $0x50] sm:$0xff] %vm222_vm0, %v329_v59  ;;  %v315_v61 = vmul.f32 %v665_v60, %v870_v35 }
  0xc9   : > { %v332_v28 = vmul.f32 1.4142135, %v316_v23 }
  0xca   : > { %v667_v62 = vpop.eup %666  ;;  %v331_v63 = vmul.f32 1.4142135, %v315_v61 }
  0xcb   : > { %v669_v3 = vpop.eup %668  ;;  %348 = vst.msk [vmem:[%s765_s17 + $0x68] sm:$0xff] %vm222_vm0, %v332_v28  ;;  %v318_v29 = vmul.f32 %v667_v62, %v881_v40 }
  0xcc   : > { %347 = vst.msk [vmem:[%s765_s17 + $0x60] sm:$0xff] %vm222_vm0, %v331_v63  ;;  %v317_v4 = vmul.f32 %v669_v3, %v886_v41 }
  0xcd   : > { %v334_v5 = vmul.f32 1.4142135, %v318_v29 }
  0xce   : > { %v333_v7 = vmul.f32 1.4142135, %v317_v4 }
  0xcf   : > { %350 = vst.msk [vmem:[%s765_s17 + $0x78] sm:$0xff] %vm222_vm0, %v334_v5 }
  0xd0   : > { %349 = vst.msk [vmem:[%s765_s17 + $0x70] sm:$0xff] %vm222_vm0, %v333_v7 }
  0xd1 PF: > { %p611_p6 = scmp.eq.s32.totalorder %s716_s9, 0 }
  0xd3   : > { %354 = sbr.rel (%p611_p6) target bundleno = 408 (0x198), region = 36 }
  0xd8   : > { %v948_v34 = vld [vmem:[%s1131_s1 + $0x10] sm:$0xff]  ;;  %vm387_vm1 = vcmask 261120   ;;  %v953_v35 = vld [vmem:[%s1131_s1] sm:$0xff]  ;;  %v958_v40 = vld [vmem:[%s1131_s1 + $0x18] sm:$0xff] }
  0xd9   : > { %v373_v41 = vmul.f32 %v948_v34, %v948_v34  ;;  %v371_v10 = vmul.f32 %v953_v35, %v953_v35  ;;  %v374_v11 = vmul.f32 %v958_v40, %v958_v40  ;;  %v969_v12 = vld [vmem:[%s1131_s1 + $0x8] sm:$0xff]  ;;  %v981_v15 = vld [vmem:[%s1131_s1 + $0x20] sm:$0xff]  ;;  %v994_v0 = vld [vmem:[%s1131_s1 + $0x38] sm:$0xff] }
  0xda   : > { %v372_v13 = vmul.f32 %v969_v12, %v969_v12  ;;  %v976_v14 = vld [vmem:[%s1131_s1 + $0x28] sm:$0xff]  ;;  %v375_v25 = vmul.f32 %v981_v15, %v981_v15  ;;  %v999_v1 = vld [vmem:[%s1131_s1 + $0x30] sm:$0xff]  ;;  %v378_v30 = vmul.f32 %v994_v0, %v994_v0  ;;  %v1015_v33 = vld [vmem:[%s1131_s1 + $0x40] sm:$0xff] }
  0xdb   : > { %v394_v18 = vsel %vm387_vm1, %v373_v41, 0.0  ;;  %v388_v19 = vsel %vm387_vm1, %v371_v10, 0.0  ;;  %v397_v20 = vsel %vm387_vm1, %v374_v11, 0.0  ;;  %v376_v24 = vmul.f32 %v976_v14, %v976_v14  ;;  %v1010_v32 = vld [vmem:[%s1131_s1 + $0x48] sm:$0xff]  ;;  %v1026_v38 = vld [vmem:[%s1131_s1 + $0x58] sm:$0xff]  ;;  %v1031_v39 = vld [vmem:[%s1131_s1 + $0x50] sm:$0xff] }
  0xdc   : > { %395 = vadd.xlane.f32.xlu1 %v394_v18  ;;  %389 = vadd.xlane.f32.xlu0 %v388_v19  ;;  %v391_v21 = vsel %vm387_vm1, %v372_v13, 0.0  ;;  %v400_v27 = vsel %vm387_vm1, %v375_v25, 0.0  ;;  %v377_v31 = vmul.f32 %v999_v1, %v999_v1  ;;  %v409_v2 = vsel %vm387_vm1, %v378_v30, 0.0  ;;  %v1042_v8 = vld [vmem:[%s1131_s1 + $0x68] sm:$0xff]  ;;  %v1047_v46 = vld [vmem:[%s1131_s1 + $0x60] sm:$0xff]  ;;  %v1058_v50 = vld [vmem:[%s1131_s1 + $0x78] sm:$0xff] }
  0xdd   : > { %v403_v26 = vsel %vm387_vm1, %v376_v24, 0.0  ;;  %v380_v37 = vmul.f32 %v1010_v32, %v1010_v32  ;;  %v379_v6 = vmul.f32 %v1015_v33, %v1015_v33  ;;  %v382_v44 = vmul.f32 %v1026_v38, %v1026_v38  ;;  %v1063_v51 = vld [vmem:[%s1131_s1 + $0x70] sm:$0xff] }
  0xde   : > { %v406_v36 = vsel %vm387_vm1, %v377_v31, 0.0  ;;  %v381_v45 = vmul.f32 %v1031_v39, %v1031_v39  ;;  %v384_v48 = vmul.f32 %v1042_v8, %v1042_v8  ;;  %v383_v49 = vmul.f32 %v1047_v46, %v1047_v46 }
  0xdf   : > { %v415_v42 = vsel %vm387_vm1, %v380_v37, 0.0  ;;  %v412_v43 = vsel %vm387_vm1, %v379_v6, 0.0  ;;  %v421_v47 = vsel %vm387_vm1, %v382_v44, 0.0  ;;  %v386_v53 = vmul.f32 %v1058_v50, %v1058_v50 }
  0xe0   : > { %398 = vadd.xlane.f32.xlu1 %v397_v20  ;;  %392 = vadd.xlane.f32.xlu0 %v391_v21  ;;  %v418_v9 = vsel %vm387_vm1, %v381_v45, 0.0  ;;  %v427_v52 = vsel %vm387_vm1, %v384_v48, 0.0  ;;  %v424_v16 = vsel %vm387_vm1, %v383_v49, 0.0  ;;  %v385_v54 = vmul.f32 %v1063_v51, %v1063_v51 }
  0xe1   : > { %v433_v17 = vsel %vm387_vm1, %v386_v53, 0.0 }
  0xe2   : > { %v430_v55 = vsel %vm387_vm1, %v385_v54, 0.0 }
  0xe4   : > { %404 = vadd.xlane.f32.xlu1 %v403_v26  ;;  %401 = vadd.xlane.f32.xlu0 %v400_v27 }
  0xe8   : > { %410 = vadd.xlane.f32.xlu1 %v409_v2  ;;  %407 = vadd.xlane.f32.xlu0 %v406_v36 }
  0xec   : > { %416 = vadd.xlane.f32.xlu1 %v415_v42  ;;  %413 = vadd.xlane.f32.xlu0 %v412_v43 }
  0xf0   : > { %422 = vadd.xlane.f32.xlu1 %v421_v47  ;;  %419 = vadd.xlane.f32.xlu0 %v418_v9 }
  0xf4   : > { %428 = vadd.xlane.f32.xlu1 %v427_v52  ;;  %425 = vadd.xlane.f32.xlu0 %v424_v16 }
  0xf8   : > { %434 = vadd.xlane.f32.xlu1 %v433_v17  ;;  %431 = vadd.xlane.f32.xlu0 %v430_v55 }
 0x165   : > { %v396_v56 = vpop.xlane.xlu1 %395  ;;  %v390_v57 = vpop.xlane.xlu0 %389 }
 0x166   : > { %v438_v22 = vmax.f32 %v396_v56, 1e-24  ;;  %v436_v58 = vmax.f32 %v390_v57, 1e-24 }
 0x168   : > { %670 = vrsqrt.f32 %v438_v22 }
 0x169   : > { %672 = vrsqrt.f32 %v436_v58  ;;  %v399_v59 = vpop.xlane.xlu1 %398  ;;  %v393_v60 = vpop.xlane.xlu0 %392 }
 0x16a   : > { %v439_v23 = vmax.f32 %v399_v59, 1e-24  ;;  %v437_v61 = vmax.f32 %v393_v60, 1e-24 }
 0x16c   : > { %674 = vrsqrt.f32 %v439_v23 }
 0x16d   : > { %676 = vrsqrt.f32 %v437_v61  ;;  %v405_v28 = vpop.xlane.xlu1 %404  ;;  %v402_v62 = vpop.xlane.xlu0 %401 }
 0x16e   : > { %v441_v63 = vmax.f32 %v405_v28, 1e-24  ;;  %v440_v3 = vmax.f32 %v402_v62, 1e-24 }
 0x170   : > { %678 = vrsqrt.f32 %v441_v63 }
 0x171   : > { %680 = vrsqrt.f32 %v440_v3  ;;  %v411_v29 = vpop.xlane.xlu1 %410  ;;  %v408_v4 = vpop.xlane.xlu0 %407 }
 0x172   : > { %v443_v5 = vmax.f32 %v411_v29, 1e-24  ;;  %v442_v7 = vmax.f32 %v408_v4, 1e-24 }
 0x174   : > { %682 = vrsqrt.f32 %v443_v5 }
 0x175   : > { %v671_v41 = vpop.eup %670  ;;  %684 = vrsqrt.f32 %v442_v7  ;;  %v417_v10 = vpop.xlane.xlu1 %416 }
 0x176   : > { %v414_v11 = vpop.xlane.xlu0 %413  ;;  %v673_v13 = vpop.eup %672  ;;  %v470_v18 = vmul.f32 %v671_v41, %v948_v34  ;;  %v445_v19 = vmax.f32 %v417_v10, 1e-24 }
 0x177   : > { %v444_v20 = vmax.f32 %v414_v11, 1e-24  ;;  %v468_v21 = vmul.f32 %v673_v13, %v953_v35 }
 0x178   : > { %v486_v24 = vmul.f32 1.4142135, %v470_v18  ;;  %686 = vrsqrt.f32 %v445_v19 }
 0x179   : > { %v675_v25 = vpop.eup %674  ;;  %v484_v26 = vmul.f32 1.4142135, %v468_v21  ;;  %688 = vrsqrt.f32 %v444_v20  ;;  %v423_v27 = vpop.xlane.xlu1 %422 }
 0x17a   : > { %v420_v30 = vpop.xlane.xlu0 %419  ;;  %v677_v31 = vpop.eup %676  ;;  %502 = vst.msk [vmem:[%s765_s17 + $0x10] sm:$0xff] %vm387_vm1, %v486_v24  ;;  %v471_v2 = vmul.f32 %v675_v25, %v958_v40  ;;  %v447_v36 = vmax.f32 %v423_v27, 1e-24 }
 0x17b   : > { %v446_v34 = vmax.f32 %v420_v30, 1e-24  ;;  %500 = vst.msk [vmem:[%s765_s17] sm:$0xff] %vm387_vm1, %v484_v26  ;;  %v469_v35 = vmul.f32 %v677_v31, %v969_v12 }
 0x17c   : > { %v487_v37 = vmul.f32 1.4142135, %v471_v2  ;;  %690 = vrsqrt.f32 %v447_v36 }
 0x17d   : > { %v679_v6 = vpop.eup %678  ;;  %v485_v42 = vmul.f32 1.4142135, %v469_v35  ;;  %692 = vrsqrt.f32 %v446_v34  ;;  %v429_v43 = vpop.xlane.xlu1 %428 }
 0x17e   : > { %v426_v44 = vpop.xlane.xlu0 %425  ;;  %v681_v45 = vpop.eup %680  ;;  %503 = vst.msk [vmem:[%s765_s17 + $0x18] sm:$0xff] %vm387_vm1, %v487_v37  ;;  %v473_v40 = vmul.f32 %v679_v6, %v976_v14  ;;  %v449_v47 = vmax.f32 %v429_v43, 1e-24 }
 0x17f   : > { %v448_v9 = vmax.f32 %v426_v44, 1e-24  ;;  %501 = vst.msk [vmem:[%s765_s17 + $0x8] sm:$0xff] %vm387_vm1, %v485_v42  ;;  %v472_v12 = vmul.f32 %v681_v45, %v981_v15 }
 0x180   : > { %v489_v48 = vmul.f32 1.4142135, %v473_v40  ;;  %694 = vrsqrt.f32 %v449_v47 }
 0x181   : > { %v683_v49 = vpop.eup %682  ;;  %v488_v52 = vmul.f32 1.4142135, %v472_v12  ;;  %696 = vrsqrt.f32 %v448_v9  ;;  %v435_v16 = vpop.xlane.xlu1 %434 }
 0x182   : > { %v432_v53 = vpop.xlane.xlu0 %431  ;;  %v685_v54 = vpop.eup %684  ;;  %505 = vst.msk [vmem:[%s765_s17 + $0x28] sm:$0xff] %vm387_vm1, %v489_v48  ;;  %v475_v14 = vmul.f32 %v683_v49, %v994_v0  ;;  %v451_v17 = vmax.f32 %v435_v16, 1e-24 }
 0x183   : > { %v450_v55 = vmax.f32 %v432_v53, 1e-24  ;;  %504 = vst.msk [vmem:[%s765_s17 + $0x20] sm:$0xff] %vm387_vm1, %v488_v52  ;;  %v474_v15 = vmul.f32 %v685_v54, %v999_v1 }
 0x184   : > { %v491_v56 = vmul.f32 1.4142135, %v475_v14  ;;  %698 = vrsqrt.f32 %v451_v17 }
 0x185   : > { %v687_v57 = vpop.eup %686  ;;  %v490_v22 = vmul.f32 1.4142135, %v474_v15  ;;  %700 = vrsqrt.f32 %v450_v55 }
 0x186   : > { %v689_v58 = vpop.eup %688  ;;  %507 = vst.msk [vmem:[%s765_s17 + $0x38] sm:$0xff] %vm387_vm1, %v491_v56  ;;  %v477_v59 = vmul.f32 %v687_v57, %v1010_v32 }
 0x187   : > { %506 = vst.msk [vmem:[%s765_s17 + $0x30] sm:$0xff] %vm387_vm1, %v490_v22  ;;  %v476_v0 = vmul.f32 %v689_v58, %v1015_v33 }
 0x188   : > { %v493_v60 = vmul.f32 1.4142135, %v477_v59 }
 0x189   : > { %v691_v23 = vpop.eup %690  ;;  %v492_v1 = vmul.f32 1.4142135, %v476_v0 }
 0x18a   : > { %v693_v61 = vpop.eup %692  ;;  %509 = vst.msk [vmem:[%s765_s17 + $0x48] sm:$0xff] %vm387_vm1, %v493_v60  ;;  %v479_v28 = vmul.f32 %v691_v23, %v1026_v38 }
 0x18b   : > { %508 = vst.msk [vmem:[%s765_s17 + $0x40] sm:$0xff] %vm387_vm1, %v492_v1  ;;  %v478_v62 = vmul.f32 %v693_v61, %v1031_v39 }
 0x18c   : > { %v495_v32 = vmul.f32 1.4142135, %v479_v28 }
 0x18d   : > { %v695_v63 = vpop.eup %694  ;;  %v494_v3 = vmul.f32 1.4142135, %v478_v62 }
 0x18e   : > { %v697_v29 = vpop.eup %696  ;;  %511 = vst.msk [vmem:[%s765_s17 + $0x58] sm:$0xff] %vm387_vm1, %v495_v32  ;;  %v481_v33 = vmul.f32 %v695_v63, %v1042_v8 }
 0x18f   : > { %510 = vst.msk [vmem:[%s765_s17 + $0x50] sm:$0xff] %vm387_vm1, %v494_v3  ;;  %v480_v4 = vmul.f32 %v697_v29, %v1047_v46 }
 0x190   : > { %v497_v38 = vmul.f32 1.4142135, %v481_v33 }
 0x191   : > { %v699_v5 = vpop.eup %698  ;;  %v496_v7 = vmul.f32 1.4142135, %v480_v4 }
 0x192   : > { %v701_v41 = vpop.eup %700  ;;  %513 = vst.msk [vmem:[%s765_s17 + $0x68] sm:$0xff] %vm387_vm1, %v497_v38  ;;  %v483_v39 = vmul.f32 %v699_v5, %v1058_v50 }
 0x193   : > { %512 = vst.msk [vmem:[%s765_s17 + $0x60] sm:$0xff] %vm387_vm1, %v496_v7  ;;  %v482_v10 = vmul.f32 %v701_v41, %v1063_v51 }
 0x194   : > { %v499_v11 = vmul.f32 1.4142135, %v483_v39 }
 0x195   : > { %v498_v13 = vmul.f32 1.4142135, %v482_v10 }
 0x196   : > { %515 = vst.msk [vmem:[%s765_s17 + $0x78] sm:$0xff] %vm387_vm1, %v499_v11 }
 0x197   : > { %514 = vst.msk [vmem:[%s765_s17 + $0x70] sm:$0xff] %vm387_vm1, %v498_v13 }
 0x198 PF: > { %s12_s11 = sadd.s32 1, %s724_s11   ;;  %s1133_s9 = smov %s720_s10 }
 0x199   : > { %p9_p7 = scmp.ge.s32.totalorder %s12_s11, 4   ;;  %s1134_s10 = smov %s1136_s12 }
 0x19b   :  { %11 = sbr.rel (!%p9_p7) target bundleno = 2 (0x2), region = 69 }

</bundles_post_ra>
